<compile_context>
chip_gen: v7x
topology: tpu7x:2x2x1
jax: 0.10.0
libtpu: 0.0.40
codegen_flags: <defaults>
</compile_context>

<pallas_src>
import jax
import jax.numpy as jnp
from jax.experimental import pallas as pl
from jax.experimental.pallas import tpu as pltpu

EMBED_SIZE = 64
NUM_HEADS = 4
HEAD_SIZE = EMBED_SIZE // NUM_HEADS
BLOCK_SIZE = 64          # max sequence length (causal mask buffer size)
LN_EPS = 1e-5


def _normalize(x):
    """LayerNorm without the affine part (gamma/beta are folded into weights)."""
    mu = jnp.mean(x, axis=-1, keepdims=True)
    xc = x - mu
    var = jnp.mean(xc * xc, axis=-1, keepdims=True)
    return xc * jax.lax.rsqrt(var + LN_EPS)


def _make_block_kernel(bt, seq, ch):
    """Kernel closed over the static block shape (bt, seq, ch)."""
    rows = bt * seq
    nh, hd = NUM_HEADS, HEAD_SIZE

    def kernel(x_ref, wqkv_ref, bqkv_ref, wp_ref, bp_ref,
               w1_ref, b1_ref, w2_ref, b2_ref, o_ref):
        x = x_ref[...]                                            # (rows, C) f32

        # ---- LayerNorm 1 (gamma/beta + attention scale folded into wqkv/bqkv) ----
        hn = _normalize(x)

        # ---- Fused QKV projection: one (rows, C) @ (C, 3C) bf16 matmul ----
        qkv = jnp.dot(hn.astype(jnp.bfloat16), wqkv_ref[...],
                      preferred_element_type=jnp.float32) + bqkv_ref[...]

        # Causal mask, shared across batch elements & heads.
        row_i = jax.lax.broadcasted_iota(jnp.int32, (seq, seq), 0)
        col_i = jax.lax.broadcasted_iota(jnp.int32, (seq, seq), 1)
        causal = (row_i >= col_i)[None]                           # (1, T, T)

        # ---- Attention: batched over the bt batch elements, short loop over heads.
        pv_heads = []
        for h in range(nh):
            q3 = qkv[:, h * hd:(h + 1) * hd].reshape(bt, seq, hd).astype(jnp.bfloat16)
            k3 = qkv[:, ch + h * hd:ch + (h + 1) * hd].reshape(bt, seq, hd).astype(jnp.bfloat16)
            v3 = qkv[:, 2 * ch + h * hd:2 * ch + (h + 1) * hd].reshape(bt, seq, hd).astype(jnp.bfloat16)

            s = jnp.einsum('bqd,bkd->bqk', q3, k3,
                           preferred_element_type=jnp.float32)    # (bt, T, T)
            s = jnp.where(causal, s, -1e30)
            s = s - jnp.max(s, axis=-1, keepdims=True)
            p = jnp.exp(s)
            p = p * pl.reciprocal(jnp.sum(p, axis=-1, keepdims=True), approx=True)
            # TODO(synk): attention dropout omitted (identity at inference).
            pv = jnp.einsum('bqk,bkd->bqd', p.astype(jnp.bfloat16), v3,
                            preferred_element_type=jnp.float32)   # (bt, T, hd)
            pv_heads.append(pv.reshape(rows, hd))

        # Head concat (cheap lane placement) + ONE full-width output projection.
        att = jnp.concatenate(pv_heads, axis=-1).astype(jnp.bfloat16)   # (rows, C)
        att = jnp.dot(att, wp_ref[...],
                      preferred_element_type=jnp.float32) + bp_ref[...]
        x1 = x + att                                              # residual 1

        # ---- LayerNorm 2 (affine folded into w1/b1) + FeedForward ----
        h2 = _normalize(x1)
        f = jnp.dot(h2.astype(jnp.bfloat16), w1_ref[...],
                    preferred_element_type=jnp.float32) + b1_ref[...]
        f = jnp.maximum(f, 0.0)
        f = jnp.dot(f.astype(jnp.bfloat16), w2_ref[...],
                    preferred_element_type=jnp.float32) + b2_ref[...]
        # TODO(synk): projection / FFN dropout omitted (identity at inference).

        o_ref[...] = x1 + f                                       # residual 2

    return kernel


def _tensorcores_per_chip():
    """Best-effort TensorCore count: 2 on v7x-class chips, else 1 (v5e/v6e)."""
    try:
        kind = str(jax.devices()[0].device_kind).lower()
    except Exception:
        return 1
    return 2 if ("v7" in kind or "7x" in kind) else 1


def _choose_bt(B, T):
    """Generation-aware batch-block: bt=B (grid=1) on single-TC chips; an even
    per-core split on multi-TC chips.  VMEM is a non-issue at this size."""
    ncores = _tensorcores_per_chip()
    for g in range(min(ncores, B), 0, -1):
        if B % g == 0 and ((B // g) * T) % 8 == 0:
            return B // g
    return B


def _fold_params(params):
    """Fold LN affines + attention scale into the matmul weights; cast MXU weights
    to bf16 (biases stay f32, added after f32 accumulation)."""
    wqkv, wp, bp, w1, b1, w2, b2, g1, be1, g2, be2 = params
    C = wqkv.shape[0]
    scale = C ** (-0.5)            # exact power of two for C=64
    col_scale = jnp.concatenate(
        [jnp.full((1, C), scale, jnp.float32), jnp.ones((1, 2 * C), jnp.float32)],
        axis=1)
    wqkv_f = (wqkv * g1.reshape(C, 1)) * col_scale
    bqkv = (be1 @ wqkv) * col_scale
    w1_f = w1 * g2.reshape(C, 1)
    b1_f = be2 @ w1 + b1
    bf = lambda a: a.astype(jnp.bfloat16)
    return (bf(wqkv_f), bqkv, bf(wp), bp, bf(w1_f), b1_f, bf(w2), b2)


def transformer_block(x, params):
    """x: (B, T, C) float32."""
    B, T, C = x.shape
    assert C == EMBED_SIZE and T <= BLOCK_SIZE and T % 8 == 0

    weights = _fold_params(params)
    bt = _choose_bt(B, T)
    grid = (B // bt,)
    rows_blk = bt * T
    kernel = _make_block_kernel(bt, T, C)

    x2 = x.reshape(B * T, C)       # flatten (B, T) -> rows; contiguous, free

    # Weights/biases are 2-D and fully VMEM-resident (constant block index).
    w_specs = [pl.BlockSpec(w.shape, lambda g: (0, 0)) for w in weights]

    # Advisory cost estimate (weights counted once; they are not re-DMAed per step).
    H, Dh = NUM_HEADS, HEAD_SIZE
    R = B * T
    flops = int(2 * R * C * (3 * C)          # fused QKV
                + 4 * B * H * T * T * Dh     # QK^T + PV
                + 2 * R * C * C              # output projection
                + 4 * R * C * (4 * C))       # FFN (two matmuls)
    transcendentals = int(B * H * T * T + B * H * T + 2 * R)
    bytes_accessed = int(4 * 2 * R * C
                         + sum(int(w.size) * w.dtype.itemsize for w in weights))
    cost = pl.CostEstimate(flops=flops, transcendentals=transcendentals,
                           bytes_accessed=bytes_accessed)

    out = pl.pallas_call(
        kernel,
        out_shape=jax.ShapeDtypeStruct((B * T, C), jnp.float32),
        grid=grid,
        in_specs=[pl.BlockSpec((rows_blk, C), lambda g: (g, 0))] + w_specs,
        out_specs=pl.BlockSpec((rows_blk, C), lambda g: (g, 0)),
        compiler_params=pltpu.CompilerParams(dimension_semantics=("parallel",)),
        cost_estimate=cost,
    )(x2, *weights)
    return out.reshape(B, T, C)


def init_params(key):
    C = EMBED_SIZE
    keys = jax.random.split(key, 12)
    s = 0.02
    wq = s * jax.random.normal(keys[0], (C, C), jnp.float32)
    wk = s * jax.random.normal(keys[1], (C, C), jnp.float32)
    wv = s * jax.random.normal(keys[2], (C, C), jnp.float32)
    wqkv = jnp.concatenate([wq, wk, wv], axis=1)          # fused (C, 3C)
    wp = s * jax.random.normal(keys[3], (C, C), jnp.float32)
    bp = s * jax.random.normal(keys[4], (1, C), jnp.float32)
    w1 = s * jax.random.normal(keys[5], (C, 4 * C), jnp.float32)
    b1 = s * jax.random.normal(keys[6], (1, 4 * C), jnp.float32)
    w2 = s * jax.random.normal(keys[7], (4 * C, C), jnp.float32)
    b2 = jnp.zeros((1, C), jnp.float32)
    # Non-trivial LayerNorm affines so the fold-into-weights path is exercised.
    g1 = 1.0 + 0.1 * jax.random.normal(keys[8], (1, C), jnp.float32)
    be1 = 0.1 * jax.random.normal(keys[9], (1, C), jnp.float32)
    g2 = 1.0 + 0.1 * jax.random.normal(keys[10], (1, C), jnp.float32)
    be2 = 0.1 * jax.random.normal(keys[11], (1, C), jnp.float32)
    return (wqkv, wp, bp, w1, b1, w2, b2, g1, be1, g2, be2)


def reference_block(x, params):
    """Pure-JAX f32 reference matching the PyTorch forward (eval mode)."""
    wqkv, wp, bp, w1, b1, w2, b2, g1, be1, g2, be2 = params
    B, T, C = x.shape

    def ln(z, g, b):
        mu = jnp.mean(z, -1, keepdims=True)
        var = jnp.mean((z - mu) ** 2, -1, keepdims=True)
        return (z - mu) / jnp.sqrt(var + LN_EPS) * g + b

    h = ln(x, g1, be1)
    q = h @ wqkv[:, :C]
    k = h @ wqkv[:, C:2 * C]
    v = h @ wqkv[:, 2 * C:3 * C]
    mask = jnp.tril(jnp.ones((T, T), bool))
    outs = []
    for hi in range(NUM_HEADS):
        s = slice(hi * HEAD_SIZE, (hi + 1) * HEAD_SIZE)
        wei = jnp.einsum("btd,bsd->bts", q[..., s], k[..., s]) * C ** (-0.5)
        wei = jnp.where(mask, wei, -jnp.inf)
        wei = jax.nn.softmax(wei, axis=-1)
        outs.append(jnp.einsum("bts,bsd->btd", wei, v[..., s]))
    att = jnp.concatenate(outs, -1) @ wp + bp
    x1 = x + att
    h2 = ln(x1, g2, be2)
    f = jnp.maximum(h2 @ w1 + b1, 0.0) @ w2 + b2
    return x1 + f


if __name__ == "__main__":
    key = jax.random.PRNGKey(0)
    k_x1, k_x2, k_p = jax.random.split(key, 3)
    params = init_params(k_p)

    # Small shape plus a fuller (B=8, T=block_size) shape that exercises the
    # multi-batch-per-step tiling / per-core split on multi-TC chips.
    for B, T, kx in ((2, 8, k_x1), (8, BLOCK_SIZE, k_x2)):
        x = jax.random.normal(kx, (B, T, EMBED_SIZE), jnp.float32)
        out = jax.block_until_ready(transformer_block(x, params))
        ref = reference_block(x, params)
        assert out.shape == (B, T, EMBED_SIZE)
        max_err = float(jnp.max(jnp.abs(out - ref)))
        assert jnp.allclose(out, ref, rtol=2e-3, atol=2e-3), (
            f"mismatch vs reference at B={B}, T={T}, max_abs_err={max_err:.2e}")

    print("KERNEL_OK")
</pallas_src>

<mosaic_0001>
module attributes {stable_mosaic.version = 11 : i64} {
  func.func @kernel(%arg0: i32, %arg1: memref<16x64xf32, #tpu.memory_space<vmem>>, %arg2: memref<64x192xbf16, #tpu.memory_space<vmem>>, %arg3: memref<1x192xf32, #tpu.memory_space<vmem>>, %arg4: memref<64x64xbf16, #tpu.memory_space<vmem>>, %arg5: memref<1x64xf32, #tpu.memory_space<vmem>>, %arg6: memref<64x256xbf16, #tpu.memory_space<vmem>>, %arg7: memref<1x256xf32, #tpu.memory_space<vmem>>, %arg8: memref<256x64xbf16, #tpu.memory_space<vmem>>, %arg9: memref<1x64xf32, #tpu.memory_space<vmem>>, %arg10: memref<16x64xf32, #tpu.memory_space<vmem>>) attributes {dimension_semantics = [#tpu.dimension_semantics<parallel>], iteration_bounds = array<i64: 1>, scalar_prefetch = 0 : i64, scratch_operands = 0 : i64, tpu.core_type = #tpu.core_type<tc>, window_params = [{transform_indices = @transform_0, window_bounds = array<i64: 16, 64>}, {pipeline_mode = #tpu.pipeline_mode<synchronous>, transform_indices = @transform_1, window_bounds = array<i64: 64, 192>}, {pipeline_mode = #tpu.pipeline_mode<synchronous>, transform_indices = @transform_2, window_bounds = array<i64: 1, 192>}, {pipeline_mode = #tpu.pipeline_mode<synchronous>, transform_indices = @transform_3, window_bounds = array<i64: 64, 64>}, {pipeline_mode = #tpu.pipeline_mode<synchronous>, transform_indices = @transform_4, window_bounds = array<i64: 1, 64>}, {pipeline_mode = #tpu.pipeline_mode<synchronous>, transform_indices = @transform_5, window_bounds = array<i64: 64, 256>}, {pipeline_mode = #tpu.pipeline_mode<synchronous>, transform_indices = @transform_6, window_bounds = array<i64: 1, 256>}, {pipeline_mode = #tpu.pipeline_mode<synchronous>, transform_indices = @transform_7, window_bounds = array<i64: 256, 64>}, {pipeline_mode = #tpu.pipeline_mode<synchronous>, transform_indices = @transform_8, window_bounds = array<i64: 1, 64>}, {transform_indices = @transform_9, window_bounds = array<i64: 16, 64>}]} {
    %c0 = arith.constant 0 : index
    %c0_0 = arith.constant 0 : index
    %0 = vector.load %arg1[%c0, %c0_0] : memref<16x64xf32, #tpu.memory_space<vmem>>, vector<16x64xf32>
    %cst = arith.constant dense<0.000000e+00> : vector<16xf32>
    %1 = vector.multi_reduction <add>, %0, %cst [1] : vector<16x64xf32> to vector<16xf32>
    %2 = vector.shape_cast %1 : vector<16xf32> to vector<16x1xf32>
    %cst_1 = arith.constant 6.400000e+01 : f32
    %3 = vector.broadcast %cst_1 : f32 to vector<16x1xf32>
    %4 = arith.divf %2, %3 : vector<16x1xf32>
    %5 = vector.broadcast %4 : vector<16x1xf32> to vector<16x64xf32>
    %6 = arith.subf %0, %5 : vector<16x64xf32>
    %7 = arith.mulf %6, %6 : vector<16x64xf32>
    %cst_2 = arith.constant dense<0.000000e+00> : vector<16xf32>
    %8 = vector.multi_reduction <add>, %7, %cst_2 [1] : vector<16x64xf32> to vector<16xf32>
    %9 = vector.shape_cast %8 : vector<16xf32> to vector<16x1xf32>
    %cst_3 = arith.constant 6.400000e+01 : f32
    %10 = vector.broadcast %cst_3 : f32 to vector<16x1xf32>
    %11 = arith.divf %9, %10 : vector<16x1xf32>
    %cst_4 = arith.constant 9.99999974E-6 : f32
    %12 = vector.broadcast %cst_4 : f32 to vector<16x1xf32>
    %13 = arith.addf %11, %12 : vector<16x1xf32>
    %14 = math.rsqrt %13 : vector<16x1xf32>
    %15 = vector.broadcast %14 : vector<16x1xf32> to vector<16x64xf32>
    %16 = arith.mulf %6, %15 : vector<16x64xf32>
    %17 = arith.truncf %16 : vector<16x64xf32> to vector<16x64xbf16>
    %c0_5 = arith.constant 0 : index
    %c0_6 = arith.constant 0 : index
    %18 = vector.load %arg2[%c0_5, %c0_6] : memref<64x192xbf16, #tpu.memory_space<vmem>>, vector<64x192xbf16>
    %cst_7 = arith.constant dense<0.000000e+00> : vector<16x192xf32>
    %19 = tpu.matmul %17, %18, %cst_7 {dimension_numbers = #tpu.dot_dimension_numbers<[1], [0], [0], [1], [0, 0, 1, 1], [], []>} : vector<16x64xbf16>, vector<64x192xbf16>, vector<16x192xf32> -> vector<16x192xf32>
    %c0_8 = arith.constant 0 : index
    %c0_9 = arith.constant 0 : index
    %20 = vector.load %arg3[%c0_8, %c0_9] : memref<1x192xf32, #tpu.memory_space<vmem>>, vector<1x192xf32>
    %21 = vector.broadcast %20 : vector<1x192xf32> to vector<16x192xf32>
    %22 = arith.addf %19, %21 : vector<16x192xf32>
    %23 = tpu.iota {dimensions = array<i32: 0>} : vector<8x8xi32>
    %24 = tpu.iota {dimensions = array<i32: 1>} : vector<8x8xi32>
    %25 = arith.cmpi sge, %23, %24 : vector<8x8xi32>
    %26 = vector.shape_cast %25 : vector<8x8xi1> to vector<1x8x8xi1>
    %27 = vector.extract_strided_slice %22 {offsets = [0, 0], sizes = [16, 16], strides = [1, 1]} : vector<16x192xf32> to vector<16x16xf32>
    %28 = vector.shape_cast %27 : vector<16x16xf32> to vector<2x8x16xf32>
    %29 = arith.truncf %28 : vector<2x8x16xf32> to vector<2x8x16xbf16>
    %30 = vector.extract_strided_slice %22 {offsets = [0, 64], sizes = [16, 16], strides = [1, 1]} : vector<16x192xf32> to vector<16x16xf32>
    %31 = vector.shape_cast %30 : vector<16x16xf32> to vector<2x8x16xf32>
    %32 = arith.truncf %31 : vector<2x8x16xf32> to vector<2x8x16xbf16>
    %33 = vector.extract_strided_slice %22 {offsets = [0, 128], sizes = [16, 16], strides = [1, 1]} : vector<16x192xf32> to vector<16x16xf32>
    %34 = vector.shape_cast %33 : vector<16x16xf32> to vector<2x8x16xf32>
    %35 = arith.truncf %34 : vector<2x8x16xf32> to vector<2x8x16xbf16>
    "tpu.trace_start"() <{level = 10 : i32, message = "bqd,bkd->bqk"}> : () -> ()
    %cst_10 = arith.constant dense<0.000000e+00> : vector<2x8x8xf32>
    %36 = tpu.matmul %29, %32, %cst_10 {dimension_numbers = #tpu.dot_dimension_numbers<[2], [2], [1], [1], [0, 0, 0, 1, 1, 1], [0], [0]>} : vector<2x8x16xbf16>, vector<2x8x16xbf16>, vector<2x8x8xf32> -> vector<2x8x8xf32>
    %cst_11 = arith.constant -1.000000e+30 : f32
    "tpu.trace_stop"() : () -> ()
    %37 = vector.shape_cast %26 : vector<1x8x8xi1> to vector<1x8x8xi1>
    %38 = vector.broadcast %37 : vector<1x8x8xi1> to vector<2x8x8xi1>
    %39 = vector.broadcast %cst_11 : f32 to vector<2x8x8xf32>
    %40 = arith.select %38, %36, %39 : vector<2x8x8xi1>, vector<2x8x8xf32>
    %cst_12 = arith.constant dense<0xFF800000> : vector<2x8xf32>
    %41 = vector.multi_reduction <maximumf>, %40, %cst_12 [2] : vector<2x8x8xf32> to vector<2x8xf32>
    %42 = vector.shape_cast %41 : vector<2x8xf32> to vector<2x8x1xf32>
    %43 = vector.broadcast %42 : vector<2x8x1xf32> to vector<2x8x8xf32>
    %44 = arith.subf %40, %43 : vector<2x8x8xf32>
    %45 = math.exp %44 : vector<2x8x8xf32>
    %cst_13 = arith.constant dense<0.000000e+00> : vector<2x8xf32>
    %46 = vector.multi_reduction <add>, %45, %cst_13 [2] : vector<2x8x8xf32> to vector<2x8xf32>
    %47 = vector.shape_cast %46 : vector<2x8xf32> to vector<2x8x1xf32>
    %48 = tpu.reciprocal %47 {approx = true} : vector<2x8x1xf32> -> vector<2x8x1xf32>
    %49 = vector.broadcast %48 : vector<2x8x1xf32> to vector<2x8x8xf32>
    %50 = arith.mulf %45, %49 : vector<2x8x8xf32>
    %51 = arith.truncf %50 : vector<2x8x8xf32> to vector<2x8x8xbf16>
    "tpu.trace_start"() <{level = 10 : i32, message = "bqk,bkd->bqd"}> : () -> ()
    %cst_14 = arith.constant dense<0.000000e+00> : vector<2x8x16xf32>
    %52 = tpu.matmul %51, %35, %cst_14 {dimension_numbers = #tpu.dot_dimension_numbers<[2], [1], [1], [2], [0, 0, 0, 1, 1, 2], [0], [0]>} : vector<2x8x8xbf16>, vector<2x8x16xbf16>, vector<2x8x16xf32> -> vector<2x8x16xf32>
    "tpu.trace_stop"() : () -> ()
    %53 = vector.shape_cast %52 : vector<2x8x16xf32> to vector<16x16xf32>
    %54 = vector.extract_strided_slice %22 {offsets = [0, 16], sizes = [16, 16], strides = [1, 1]} : vector<16x192xf32> to vector<16x16xf32>
    %55 = vector.shape_cast %54 : vector<16x16xf32> to vector<2x8x16xf32>
    %56 = arith.truncf %55 : vector<2x8x16xf32> to vector<2x8x16xbf16>
    %57 = vector.extract_strided_slice %22 {offsets = [0, 80], sizes = [16, 16], strides = [1, 1]} : vector<16x192xf32> to vector<16x16xf32>
    %58 = vector.shape_cast %57 : vector<16x16xf32> to vector<2x8x16xf32>
    %59 = arith.truncf %58 : vector<2x8x16xf32> to vector<2x8x16xbf16>
    %60 = vector.extract_strided_slice %22 {offsets = [0, 144], sizes = [16, 16], strides = [1, 1]} : vector<16x192xf32> to vector<16x16xf32>
    %61 = vector.shape_cast %60 : vector<16x16xf32> to vector<2x8x16xf32>
    %62 = arith.truncf %61 : vector<2x8x16xf32> to vector<2x8x16xbf16>
    "tpu.trace_start"() <{level = 10 : i32, message = "bqd,bkd->bqk"}> : () -> ()
    %cst_15 = arith.constant dense<0.000000e+00> : vector<2x8x8xf32>
    %63 = tpu.matmul %56, %59, %cst_15 {dimension_numbers = #tpu.dot_dimension_numbers<[2], [2], [1], [1], [0, 0, 0, 1, 1, 1], [0], [0]>} : vector<2x8x16xbf16>, vector<2x8x16xbf16>, vector<2x8x8xf32> -> vector<2x8x8xf32>
    %cst_16 = arith.constant -1.000000e+30 : f32
    "tpu.trace_stop"() : () -> ()
    %64 = vector.shape_cast %26 : vector<1x8x8xi1> to vector<1x8x8xi1>
    %65 = vector.broadcast %64 : vector<1x8x8xi1> to vector<2x8x8xi1>
    %66 = vector.broadcast %cst_16 : f32 to vector<2x8x8xf32>
    %67 = arith.select %65, %63, %66 : vector<2x8x8xi1>, vector<2x8x8xf32>
    %cst_17 = arith.constant dense<0xFF800000> : vector<2x8xf32>
    %68 = vector.multi_reduction <maximumf>, %67, %cst_17 [2] : vector<2x8x8xf32> to vector<2x8xf32>
    %69 = vector.shape_cast %68 : vector<2x8xf32> to vector<2x8x1xf32>
    %70 = vector.broadcast %69 : vector<2x8x1xf32> to vector<2x8x8xf32>
    %71 = arith.subf %67, %70 : vector<2x8x8xf32>
    %72 = math.exp %71 : vector<2x8x8xf32>
    %cst_18 = arith.constant dense<0.000000e+00> : vector<2x8xf32>
    %73 = vector.multi_reduction <add>, %72, %cst_18 [2] : vector<2x8x8xf32> to vector<2x8xf32>
    %74 = vector.shape_cast %73 : vector<2x8xf32> to vector<2x8x1xf32>
    %75 = tpu.reciprocal %74 {approx = true} : vector<2x8x1xf32> -> vector<2x8x1xf32>
    %76 = vector.broadcast %75 : vector<2x8x1xf32> to vector<2x8x8xf32>
    %77 = arith.mulf %72, %76 : vector<2x8x8xf32>
    %78 = arith.truncf %77 : vector<2x8x8xf32> to vector<2x8x8xbf16>
    "tpu.trace_start"() <{level = 10 : i32, message = "bqk,bkd->bqd"}> : () -> ()
    %cst_19 = arith.constant dense<0.000000e+00> : vector<2x8x16xf32>
    %79 = tpu.matmul %78, %62, %cst_19 {dimension_numbers = #tpu.dot_dimension_numbers<[2], [1], [1], [2], [0, 0, 0, 1, 1, 2], [0], [0]>} : vector<2x8x8xbf16>, vector<2x8x16xbf16>, vector<2x8x16xf32> -> vector<2x8x16xf32>
    "tpu.trace_stop"() : () -> ()
    %80 = vector.shape_cast %79 : vector<2x8x16xf32> to vector<16x16xf32>
    %81 = vector.extract_strided_slice %22 {offsets = [0, 32], sizes = [16, 16], strides = [1, 1]} : vector<16x192xf32> to vector<16x16xf32>
    %82 = vector.shape_cast %81 : vector<16x16xf32> to vector<2x8x16xf32>
    %83 = arith.truncf %82 : vector<2x8x16xf32> to vector<2x8x16xbf16>
    %84 = vector.extract_strided_slice %22 {offsets = [0, 96], sizes = [16, 16], strides = [1, 1]} : vector<16x192xf32> to vector<16x16xf32>
    %85 = vector.shape_cast %84 : vector<16x16xf32> to vector<2x8x16xf32>
    %86 = arith.truncf %85 : vector<2x8x16xf32> to vector<2x8x16xbf16>
    %87 = vector.extract_strided_slice %22 {offsets = [0, 160], sizes = [16, 16], strides = [1, 1]} : vector<16x192xf32> to vector<16x16xf32>
    %88 = vector.shape_cast %87 : vector<16x16xf32> to vector<2x8x16xf32>
    %89 = arith.truncf %88 : vector<2x8x16xf32> to vector<2x8x16xbf16>
    "tpu.trace_start"() <{level = 10 : i32, message = "bqd,bkd->bqk"}> : () -> ()
    %cst_20 = arith.constant dense<0.000000e+00> : vector<2x8x8xf32>
    %90 = tpu.matmul %83, %86, %cst_20 {dimension_numbers = #tpu.dot_dimension_numbers<[2], [2], [1], [1], [0, 0, 0, 1, 1, 1], [0], [0]>} : vector<2x8x16xbf16>, vector<2x8x16xbf16>, vector<2x8x8xf32> -> vector<2x8x8xf32>
    %cst_21 = arith.constant -1.000000e+30 : f32
    "tpu.trace_stop"() : () -> ()
    %91 = vector.shape_cast %26 : vector<1x8x8xi1> to vector<1x8x8xi1>
    %92 = vector.broadcast %91 : vector<1x8x8xi1> to vector<2x8x8xi1>
    %93 = vector.broadcast %cst_21 : f32 to vector<2x8x8xf32>
    %94 = arith.select %92, %90, %93 : vector<2x8x8xi1>, vector<2x8x8xf32>
    %cst_22 = arith.constant dense<0xFF800000> : vector<2x8xf32>
    %95 = vector.multi_reduction <maximumf>, %94, %cst_22 [2] : vector<2x8x8xf32> to vector<2x8xf32>
    %96 = vector.shape_cast %95 : vector<2x8xf32> to vector<2x8x1xf32>
    %97 = vector.broadcast %96 : vector<2x8x1xf32> to vector<2x8x8xf32>
    %98 = arith.subf %94, %97 : vector<2x8x8xf32>
    %99 = math.exp %98 : vector<2x8x8xf32>
    %cst_23 = arith.constant dense<0.000000e+00> : vector<2x8xf32>
    %100 = vector.multi_reduction <add>, %99, %cst_23 [2] : vector<2x8x8xf32> to vector<2x8xf32>
    %101 = vector.shape_cast %100 : vector<2x8xf32> to vector<2x8x1xf32>
    %102 = tpu.reciprocal %101 {approx = true} : vector<2x8x1xf32> -> vector<2x8x1xf32>
    %103 = vector.broadcast %102 : vector<2x8x1xf32> to vector<2x8x8xf32>
    %104 = arith.mulf %99, %103 : vector<2x8x8xf32>
    %105 = arith.truncf %104 : vector<2x8x8xf32> to vector<2x8x8xbf16>
    "tpu.trace_start"() <{level = 10 : i32, message = "bqk,bkd->bqd"}> : () -> ()
    %cst_24 = arith.constant dense<0.000000e+00> : vector<2x8x16xf32>
    %106 = tpu.matmul %105, %89, %cst_24 {dimension_numbers = #tpu.dot_dimension_numbers<[2], [1], [1], [2], [0, 0, 0, 1, 1, 2], [0], [0]>} : vector<2x8x8xbf16>, vector<2x8x16xbf16>, vector<2x8x16xf32> -> vector<2x8x16xf32>
    "tpu.trace_stop"() : () -> ()
    %107 = vector.shape_cast %106 : vector<2x8x16xf32> to vector<16x16xf32>
    %108 = vector.extract_strided_slice %22 {offsets = [0, 48], sizes = [16, 16], strides = [1, 1]} : vector<16x192xf32> to vector<16x16xf32>
    %109 = vector.shape_cast %108 : vector<16x16xf32> to vector<2x8x16xf32>
    %110 = arith.truncf %109 : vector<2x8x16xf32> to vector<2x8x16xbf16>
    %111 = vector.extract_strided_slice %22 {offsets = [0, 112], sizes = [16, 16], strides = [1, 1]} : vector<16x192xf32> to vector<16x16xf32>
    %112 = vector.shape_cast %111 : vector<16x16xf32> to vector<2x8x16xf32>
    %113 = arith.truncf %112 : vector<2x8x16xf32> to vector<2x8x16xbf16>
    %114 = vector.extract_strided_slice %22 {offsets = [0, 176], sizes = [16, 16], strides = [1, 1]} : vector<16x192xf32> to vector<16x16xf32>
    %115 = vector.shape_cast %114 : vector<16x16xf32> to vector<2x8x16xf32>
    %116 = arith.truncf %115 : vector<2x8x16xf32> to vector<2x8x16xbf16>
    "tpu.trace_start"() <{level = 10 : i32, message = "bqd,bkd->bqk"}> : () -> ()
    %cst_25 = arith.constant dense<0.000000e+00> : vector<2x8x8xf32>
    %117 = tpu.matmul %110, %113, %cst_25 {dimension_numbers = #tpu.dot_dimension_numbers<[2], [2], [1], [1], [0, 0, 0, 1, 1, 1], [0], [0]>} : vector<2x8x16xbf16>, vector<2x8x16xbf16>, vector<2x8x8xf32> -> vector<2x8x8xf32>
    %cst_26 = arith.constant -1.000000e+30 : f32
    "tpu.trace_stop"() : () -> ()
    %118 = vector.shape_cast %26 : vector<1x8x8xi1> to vector<1x8x8xi1>
    %119 = vector.broadcast %118 : vector<1x8x8xi1> to vector<2x8x8xi1>
    %120 = vector.broadcast %cst_26 : f32 to vector<2x8x8xf32>
    %121 = arith.select %119, %117, %120 : vector<2x8x8xi1>, vector<2x8x8xf32>
    %cst_27 = arith.constant dense<0xFF800000> : vector<2x8xf32>
    %122 = vector.multi_reduction <maximumf>, %121, %cst_27 [2] : vector<2x8x8xf32> to vector<2x8xf32>
    %123 = vector.shape_cast %122 : vector<2x8xf32> to vector<2x8x1xf32>
    %124 = vector.broadcast %123 : vector<2x8x1xf32> to vector<2x8x8xf32>
    %125 = arith.subf %121, %124 : vector<2x8x8xf32>
    %126 = math.exp %125 : vector<2x8x8xf32>
    %cst_28 = arith.constant dense<0.000000e+00> : vector<2x8xf32>
    %127 = vector.multi_reduction <add>, %126, %cst_28 [2] : vector<2x8x8xf32> to vector<2x8xf32>
    %128 = vector.shape_cast %127 : vector<2x8xf32> to vector<2x8x1xf32>
    %129 = tpu.reciprocal %128 {approx = true} : vector<2x8x1xf32> -> vector<2x8x1xf32>
    %130 = vector.broadcast %129 : vector<2x8x1xf32> to vector<2x8x8xf32>
    %131 = arith.mulf %126, %130 : vector<2x8x8xf32>
    %132 = arith.truncf %131 : vector<2x8x8xf32> to vector<2x8x8xbf16>
    "tpu.trace_start"() <{level = 10 : i32, message = "bqk,bkd->bqd"}> : () -> ()
    %cst_29 = arith.constant dense<0.000000e+00> : vector<2x8x16xf32>
    %133 = tpu.matmul %132, %116, %cst_29 {dimension_numbers = #tpu.dot_dimension_numbers<[2], [1], [1], [2], [0, 0, 0, 1, 1, 2], [0], [0]>} : vector<2x8x8xbf16>, vector<2x8x16xbf16>, vector<2x8x16xf32> -> vector<2x8x16xf32>
    "tpu.trace_stop"() : () -> ()
    %134 = vector.shape_cast %133 : vector<2x8x16xf32> to vector<16x16xf32>
    %135 = tpu.concatenate %53, %80, %107, %134 in 1 : vector<16x16xf32>, vector<16x16xf32>, vector<16x16xf32>, vector<16x16xf32> -> vector<16x64xf32>
    %136 = arith.truncf %135 : vector<16x64xf32> to vector<16x64xbf16>
    %c0_30 = arith.constant 0 : index
    %c0_31 = arith.constant 0 : index
    %137 = vector.load %arg4[%c0_30, %c0_31] : memref<64x64xbf16, #tpu.memory_space<vmem>>, vector<64x64xbf16>
    %cst_32 = arith.constant dense<0.000000e+00> : vector<16x64xf32>
    %138 = tpu.matmul %136, %137, %cst_32 {dimension_numbers = #tpu.dot_dimension_numbers<[1], [0], [0], [1], [0, 0, 1, 1], [], []>} : vector<16x64xbf16>, vector<64x64xbf16>, vector<16x64xf32> -> vector<16x64xf32>
    %c0_33 = arith.constant 0 : index
    %c0_34 = arith.constant 0 : index
    %139 = vector.load %arg5[%c0_33, %c0_34] : memref<1x64xf32, #tpu.memory_space<vmem>>, vector<1x64xf32>
    %140 = vector.broadcast %139 : vector<1x64xf32> to vector<16x64xf32>
    %141 = arith.addf %138, %140 : vector<16x64xf32>
    %142 = arith.addf %0, %141 : vector<16x64xf32>
    %cst_35 = arith.constant dense<0.000000e+00> : vector<16xf32>
    %143 = vector.multi_reduction <add>, %142, %cst_35 [1] : vector<16x64xf32> to vector<16xf32>
    %144 = vector.shape_cast %143 : vector<16xf32> to vector<16x1xf32>
    %cst_36 = arith.constant 6.400000e+01 : f32
    %145 = vector.broadcast %cst_36 : f32 to vector<16x1xf32>
    %146 = arith.divf %144, %145 : vector<16x1xf32>
    %147 = vector.broadcast %146 : vector<16x1xf32> to vector<16x64xf32>
    %148 = arith.subf %142, %147 : vector<16x64xf32>
    %149 = arith.mulf %148, %148 : vector<16x64xf32>
    %cst_37 = arith.constant dense<0.000000e+00> : vector<16xf32>
    %150 = vector.multi_reduction <add>, %149, %cst_37 [1] : vector<16x64xf32> to vector<16xf32>
    %151 = vector.shape_cast %150 : vector<16xf32> to vector<16x1xf32>
    %cst_38 = arith.constant 6.400000e+01 : f32
    %152 = vector.broadcast %cst_38 : f32 to vector<16x1xf32>
    %153 = arith.divf %151, %152 : vector<16x1xf32>
    %cst_39 = arith.constant 9.99999974E-6 : f32
    %154 = vector.broadcast %cst_39 : f32 to vector<16x1xf32>
    %155 = arith.addf %153, %154 : vector<16x1xf32>
    %156 = math.rsqrt %155 : vector<16x1xf32>
    %157 = vector.broadcast %156 : vector<16x1xf32> to vector<16x64xf32>
    %158 = arith.mulf %148, %157 : vector<16x64xf32>
    %159 = arith.truncf %158 : vector<16x64xf32> to vector<16x64xbf16>
    %c0_40 = arith.constant 0 : index
    %c0_41 = arith.constant 0 : index
    %160 = vector.load %arg6[%c0_40, %c0_41] : memref<64x256xbf16, #tpu.memory_space<vmem>>, vector<64x256xbf16>
    %cst_42 = arith.constant dense<0.000000e+00> : vector<16x256xf32>
    %161 = tpu.matmul %159, %160, %cst_42 {dimension_numbers = #tpu.dot_dimension_numbers<[1], [0], [0], [1], [0, 0, 1, 1], [], []>} : vector<16x64xbf16>, vector<64x256xbf16>, vector<16x256xf32> -> vector<16x256xf32>
    %c0_43 = arith.constant 0 : index
    %c0_44 = arith.constant 0 : index
    %162 = vector.load %arg7[%c0_43, %c0_44] : memref<1x256xf32, #tpu.memory_space<vmem>>, vector<1x256xf32>
    %163 = vector.broadcast %162 : vector<1x256xf32> to vector<16x256xf32>
    %164 = arith.addf %161, %163 : vector<16x256xf32>
    %cst_45 = arith.constant 0.000000e+00 : f32
    %165 = vector.broadcast %cst_45 : f32 to vector<16x256xf32>
    %166 = arith.maximumf %164, %165 : vector<16x256xf32>
    %167 = arith.truncf %166 : vector<16x256xf32> to vector<16x256xbf16>
    %c0_46 = arith.constant 0 : index
    %c0_47 = arith.constant 0 : index
    %168 = vector.load %arg8[%c0_46, %c0_47] : memref<256x64xbf16, #tpu.memory_space<vmem>>, vector<256x64xbf16>
    %cst_48 = arith.constant dense<0.000000e+00> : vector<16x64xf32>
    %169 = tpu.matmul %167, %168, %cst_48 {dimension_numbers = #tpu.dot_dimension_numbers<[1], [0], [0], [1], [0, 0, 1, 1], [], []>} : vector<16x256xbf16>, vector<256x64xbf16>, vector<16x64xf32> -> vector<16x64xf32>
    %c0_49 = arith.constant 0 : index
    %c0_50 = arith.constant 0 : index
    %170 = vector.load %arg9[%c0_49, %c0_50] : memref<1x64xf32, #tpu.memory_space<vmem>>, vector<1x64xf32>
    %171 = vector.broadcast %170 : vector<1x64xf32> to vector<16x64xf32>
    %172 = arith.addf %169, %171 : vector<16x64xf32>
    %173 = arith.addf %142, %172 : vector<16x64xf32>
    %c0_51 = arith.constant 0 : index
    %c0_52 = arith.constant 0 : index
    %174 = vector.load %arg10[%c0_51, %c0_52] : memref<16x64xf32, #tpu.memory_space<vmem>>, vector<16x64xf32>
    tpu.vector_store %arg10[%c0_51, %c0_52], %173 {strides = array<i32>} : memref<16x64xf32, #tpu.memory_space<vmem>>, vector<16x64xf32>,
    return
  }
  func.func @transform_0(%arg0: i32) -> (i32, i32) {
    %c0_i32 = arith.constant 0 : i32
    %c0_i32_0 = arith.constant 0 : i32
    return %arg0, %c0_i32 : i32, i32
  }
  func.func @transform_1(%arg0: i32) -> (i32, i32) {
    %c0_i32 = arith.constant 0 : i32
    %c0_i32_0 = arith.constant 0 : i32
    %c0_i32_1 = arith.constant 0 : i32
    return %c0_i32, %c0_i32_0 : i32, i32
  }
  func.func @transform_2(%arg0: i32) -> (i32, i32) {
    %c0_i32 = arith.constant 0 : i32
    %c0_i32_0 = arith.constant 0 : i32
    %c0_i32_1 = arith.constant 0 : i32
    return %c0_i32, %c0_i32_0 : i32, i32
  }
  func.func @transform_3(%arg0: i32) -> (i32, i32) {
    %c0_i32 = arith.constant 0 : i32
    %c0_i32_0 = arith.constant 0 : i32
    %c0_i32_1 = arith.constant 0 : i32
    return %c0_i32, %c0_i32_0 : i32, i32
  }
  func.func @transform_4(%arg0: i32) -> (i32, i32) {
    %c0_i32 = arith.constant 0 : i32
    %c0_i32_0 = arith.constant 0 : i32
    %c0_i32_1 = arith.constant 0 : i32
    return %c0_i32, %c0_i32_0 : i32, i32
  }
  func.func @transform_5(%arg0: i32) -> (i32, i32) {
    %c0_i32 = arith.constant 0 : i32
    %c0_i32_0 = arith.constant 0 : i32
    %c0_i32_1 = arith.constant 0 : i32
    return %c0_i32, %c0_i32_0 : i32, i32
  }
  func.func @transform_6(%arg0: i32) -> (i32, i32) {
    %c0_i32 = arith.constant 0 : i32
    %c0_i32_0 = arith.constant 0 : i32
    %c0_i32_1 = arith.constant 0 : i32
    return %c0_i32, %c0_i32_0 : i32, i32
  }
  func.func @transform_7(%arg0: i32) -> (i32, i32) {
    %c0_i32 = arith.constant 0 : i32
    %c0_i32_0 = arith.constant 0 : i32
    %c0_i32_1 = arith.constant 0 : i32
    return %c0_i32, %c0_i32_0 : i32, i32
  }
  func.func @transform_8(%arg0: i32) -> (i32, i32) {
    %c0_i32 = arith.constant 0 : i32
    %c0_i32_0 = arith.constant 0 : i32
    %c0_i32_1 = arith.constant 0 : i32
    return %c0_i32, %c0_i32_0 : i32, i32
  }
  func.func @transform_9(%arg0: i32) -> (i32, i32) {
    %c0_i32 = arith.constant 0 : i32
    %c0_i32_0 = arith.constant 0 : i32
    return %arg0, %c0_i32 : i32, i32
  }
}

</mosaic_0001>

<bundles_post_ra>
// kernel: tpu_custom_call.1
= control target key start
LH: loop header
LB: loop body
LE: loop exit
PB: predicated region body
PF: predicated region fallthrough
CT: control target
= control target key end

     0   :  { %vm36_vm0 = vcmask 523264   ;;  %s2323_s0 = inlined_call_operand.vmem [shape: f32[16,64], index: 0, kind: input, shape index: {}]   ;;  %s2324_s1 = inlined_call_operand.vmem [shape: bf16[64,192], index: 1, kind: input, shape index: {}]   ;;  %s2325_s2 = inlined_call_operand.vmem [shape: f32[1,192], index: 2, kind: input, shape index: {}]   ;;  %s2326_s3 = inlined_call_operand.vmem [shape: bf16[64,64], index: 3, kind: input, shape index: {}]   ;;  %s2327_s4 = inlined_call_operand.vmem [shape: f32[1,64], index: 4, kind: input, shape index: {}]   ;;  %s2328_s5 = inlined_call_operand.vmem [shape: bf16[64,256], index: 5, kind: input, shape index: {}]   ;;  %s2329_s6 = inlined_call_operand.vmem [shape: f32[1,256], index: 6, kind: input, shape index: {}]   ;;  %s2330_s7 = inlined_call_operand.vmem [shape: bf16[256,64], index: 7, kind: input, shape index: {}]   ;;  %s2331_s8 = inlined_call_operand.vmem [shape: f32[1,64], index: 8, kind: input, shape index: {}]   ;;  %s2332_s9 = inlined_call_operand.hbm [shape: f32[16,64], index: 9, kind: output, shape index: {}]  }
   0x1   :  { %v1948_v0 = vld [vmem:[%s2323_s0] sm:$0xff]  ;;  %v1953_v1 = vld [vmem:[%s2323_s0 + $0x8] sm:$0xff] }
   0x2   :  { %v37_v2 = vsel %vm36_vm0, %v1948_v0, 0.0  ;;  %v40_v3 = vsel %vm36_vm0, %v1953_v1, 0.0 }
   0x3   :  { %38 = vadd.xlane.f32.xlu0 %v37_v2 }
   0x7   :  { %41 = vadd.xlane.f32.xlu0 %v40_v3 }
   0x8   :  { %14 = vsyncpa [#allocation3], 0  ;;  %v1774_v14 = vld [vmem:[%s2324_s1 + $0x4] ss:$8 sps:$4 sm:$0xff]   ;;  %v1776_v15 = vld [vmem:[%s2324_s1] ss:$8 sps:$4 sm:$0xff]   ;;  %v75_v35 = vlaneseq }
   0x9   :  { %128 = vmatprep.subr.bf16.mxu1 %v1774_v14  ;;  %v1777_v16 = vld [vmem:[%s2324_s1 + $0x14] ss:$8 sps:$4 sm:$0xff]   ;;  %v1779_v17 = vld [vmem:[%s2324_s1 + $0x10] ss:$8 sps:$4 sm:$0xff]   ;;  %v1780_v18 = vld [vmem:[%s2324_s1 + $0x24] ss:$8 sps:$4 sm:$0xff]  }
   0xa   :  { %129 = vmatpush1.bf16.msra.mxu1 %v1776_v15  ;;  %v1882_v19 = vmov 0   ;;  %v1782_v20 = vld [vmem:[%s2324_s1 + $0x20] ss:$8 sps:$4 sm:$0xff]   ;;  %v1783_v21 = vld [vmem:[%s2324_s1 + $0x34] ss:$8 sps:$4 sm:$0xff]   ;;  %v1883_v34 = vmov 0.0  }
   0xb   :  { %130 = vmatprep.subr.bf16.mxu1 %v1777_v16  ;;  %160 = vmatprep.mubr.bf16.mxu1 %v1882_v19  ;;  %v1785_v22 = vld [vmem:[%s2324_s1 + $0x30] ss:$8 sps:$4 sm:$0xff]   ;;  %v1991_v36 = vshrl.u32 %v75_v35, 7  ;;  %v73_v38 = vld [vmem:[%s2325_s2] sm:$0x3]  ;;  %vm1884_vm1 = vmmov 0  }
   0xc   :  { %1650 = vmatprep.subr.bf16.mxu0 %v1883_v34  ;;  %1652 = vmatprep.mubr.msk.bf16.mxu0 %vm1884_vm1, %v1883_v34  ;;  %vm311_vm2 = vcmask 1043456   ;;  %s1885_s2 = smov 64   ;;  %vm183_vm3 = vcmask 130048   ;;  %v174_v60 = vand.u32 127, %v75_v35  ;;  %vm283_vm5 = vcmask 64512   ;;  %s1886_s29 = smov 48  }
   0xd   :  { %v77_v37 = vsub.s32 0, %v1991_v36  ;;  %v81_v39 = vsub.s32 1, %v1991_v36  ;;  %s1887_s30 = smov 112   ;;  %s1888_s10 = smov 32   ;;  %vm1095_vm6 = vcmask 261120   ;;  %vm1098_vm7 = vcmask 392192  }
   0xe   :  { %131 = vmatpush1.bf16.msra.mxu1 %v1779_v17  ;;  %vm2035_vm4 = vcmp.ge.s32.totalorder %v1991_v36, %v174_v60  ;;  %s1889_s11 = smov 96   ;;  %s1890_s12 = smov 16   ;;  %v1562_v36 = vld [vmem:[%s2331_s8] ss:$0 sm:$0xff] }
   0xf   :  { %132 = vmatprep.subr.bf16.mxu1 %v1780_v18  ;;  %v78_v40 = vrot.slane %v73_v38, %v77_v37  ;;  %v82_v41 = vrot.slane %v73_v38, %v81_v39  ;;  %s1891_s0 = smov 80   ;;  %s1892_s20 = smov [#allocation2]  }
  0x12   :  { %133 = vmatpush1.bf16.msra.mxu1 %v1782_v20 }
  0x13   :  { %134 = vmatprep.subr.bf16.mxu1 %v1783_v21 }
  0x16   :  { %135 = vmatpush1.bf16.msra.mxu1 %v1785_v22 }
  0x17   :  { %1638 = vmatprep.subr.bf16.mxu1 %v1883_v34 }
  0x90   :  { %v39_v4 = vpop.xlane.xlu0 %38 }
  0x91   :  { %v44_v5 = vmul.f32 0.015625, %v39_v4 }
  0x93   :  { %v46_v6 = vsub.f32 %v1948_v0, %v44_v5 }
  0x94   :  { %v42_v7 = vpop.xlane.xlu0 %41 }
  0x95   :  { %v45_v8 = vmul.f32 0.015625, %v42_v7  ;;  %v48_v9 = vmul.f32 %v46_v6, %v46_v6 }
  0x97   :  { %v47_v10 = vsub.f32 %v1953_v1, %v45_v8  ;;  %v50_v11 = vsel %vm36_vm0, %v48_v9, 0.0 }
  0x98   :  { %51 = vadd.xlane.f32.xlu1 %v50_v11 }
  0x99   :  { %v49_v12 = vmul.f32 %v47_v10, %v47_v10 }
  0x9b   :  { %v53_v13 = vsel %vm36_vm0, %v49_v12, 0.0 }
  0x9c   :  { %54 = vadd.xlane.f32.xlu1 %v53_v13 }
 0x125   :  { %v52_v23 = vpop.xlane.xlu1 %51 }
 0x126   :  { %v56_v24 = vmul.f32 0.015625, %v52_v23 }
 0x128   :  { %v58_v25 = vadd.f32 1e-05, %v56_v24 }
 0x129   :  { %v55_v26 = vpop.xlane.xlu1 %54 }
 0x12a   :  { %v57_v27 = vmul.f32 0.015625, %v55_v26  ;;  %1818 = vrsqrt.f32 %v58_v25 }
 0x12c   :  { %v59_v28 = vadd.f32 1e-05, %v57_v27 }
 0x12e   :  { %1820 = vrsqrt.f32 %v59_v28 }
 0x134   :  { %v1819_v29 = vpop.eup %1818 }
 0x135   :  { %v62_v31 = vmul.f32 %v1819_v29, %v46_v6 }
 0x138   :  { %v1821_v30 = vpop.eup %1820 }
 0x139   :  { %v63_v32 = vmul.f32 %v1821_v30, %v47_v10 }
 0x13b   :  { %v64_v33 = vpack.c.bf16 %v63_v32, %v62_v31 }
 0x13d   :  { %1530 = vmatmul.mubr.msk.bf16.vlgmr.msra.gmra.mrb[0].mxu1 %vm36_vm0, %v64_v33 }
 0x13e   :  { %1640 = vmatprep.mubr.msk.bf16.mxu1 %vm1884_vm1, %v1883_v34 }
 0x210   :  { %v162_v42 = vpop.f32.mrb[0].mxu1 }
 0x211   :  { %v163_v43 = vadd.f32 %v162_v42, %v78_v40  ;;  %v164_v44 = vpop.f32.mrb[1].mxu1 }
 0x212   :  { %v165_v45 = vadd.f32 %v164_v44, %v82_v41  ;;  %v166_v46 = vpop.f32.mrb[2].mxu1 }
 0x213   :  { %v2006_v47 = vpack.c.bf16 %v163_v43, %v163_v43  ;;  %v167_v48 = vadd.f32 %v166_v46, %v78_v40  ;;  %v168_v49 = vpop.f32.mrb[3].mxu1 }
 0x214   :  { %v2008_v50 = vpack.c.bf16 %v165_v45, %v165_v45  ;;  %v169_v51 = vadd.f32 %v168_v49, %v82_v41 }
 0x215   :  { %v2010_v52 = vpack.c.bf16 %v167_v48, %v167_v48  ;;  %181 = vrot.lane.b32.xlu0 %v2006_v47, %s1885_s2 }
 0x216   :  { %v313_v53 = vsel %vm311_vm2, %v2008_v50, 0  ;;  %v2025_v58 = vpack.c.bf16 %v169_v51, %v169_v51 }
 0x217   :  { %231 = vrot.lane.b32.xlu1 %v2010_v52, %s1885_s2  ;;  %1651 = vmatpush3.bf16.msra.mxu0 %v313_v53 }
 0x218   :  { %1662 = vmatprep.subr.bf16.mxu0 %v1883_v34  ;;  %v359_v59 = vsel %vm311_vm2, %v2025_v58, 0 }
 0x287   :  { %v182_v54 = vpop.permute.xlu0 %181 }
 0x288   :  { %v188_v55 = vsel %vm183_vm3, %v182_v54, 0 }
 0x289   :  { %1639 = vmatpush3.bf16.xpose.msra.mxu1 %v188_v55  ;;  %v232_v56 = vpop.permute.xlu1 %231 }
 0x28a   :  { %1644 = vmatprep.subr.bf16.mxu1 %v1883_v34  ;;  %v237_v57 = vsel %vm183_vm3, %v232_v56, 0 }
 0x290   :  { %1641 = vmatmul.mubr.msk.bf16.vlgmr.msra.gmra.mrb[4].mxu1 %vm183_vm3, %v2006_v47 }
 0x291   :  { %1645 = vmatpush3.bf16.xpose.msra.mxu1 %v237_v57  ;;  %1646 = vmatprep.mubr.msk.bf16.mxu1 %vm1884_vm1, %v1883_v34 }
 0x292   :  { %1656 = vmatprep.subr.bf16.mxu1 %v1883_v34 }
 0x298   :  { %1647 = vmatmul.mubr.msk.bf16.vlgmr.msra.gmra.mrb[8].mxu1 %vm183_vm3, %v2010_v52 }
 0x299   :  { %1657 = vmatpush3.bf16.msra.mxu1 %v359_v59  ;;  %1658 = vmatprep.mubr.msk.bf16.mxu1 %vm1884_vm1, %v1883_v34 }
 0x29a   :  { %1668 = vmatprep.subr.bf16.mxu1 %v1883_v34 }
 0x363   :  { %v224_v62 = vpop.f32.mrb[4].mxu1 }
 0x364   :  { %v281_v63 = vsel %vm2035_vm4, %v224_v62, -1e+30  ;;  %v1642_v2 = vpop.f32.mrb[5].mxu1 }
 0x365   :  { %v227_v3 = vpop.f32.mrb[6].mxu1  ;;  %v284_v4 = vsel %vm283_vm5, %v281_v63, -inf }
 0x366   :  { %285 = vmax.xlane.f32.xlu1 %v284_v4  ;;  %v1643_v5 = vpop.f32.mrb[7].mxu1 }
 0x36b   :  { %v273_v6 = vpop.f32.mrb[8].mxu1 }
 0x36c   :  { %v282_v7 = vsel %vm2035_vm4, %v273_v6, -1e+30  ;;  %v1648_v8 = vpop.f32.mrb[9].mxu1 }
 0x36d   :  { %v276_v9 = vpop.f32.mrb[10].mxu1  ;;  %v287_v10 = vsel %vm283_vm5, %v282_v7, -inf }
 0x36e   :  { %288 = vmax.xlane.f32.xlu0 %v287_v10  ;;  %v1649_v11 = vpop.f32.mrb[11].mxu1 }
 0x377   :  { %453 = vrot.lane.b32.xlu1 %v2010_v52, %s1886_s29 }
 0x3f3   :  { %v286_v12 = vpop.xlane.xlu1 %285 }
 0x3f4   :  { %v290_v13 = vsub.f32 %v281_v63, %v286_v12 }
 0x3f6   :  { %v292_v14 = vmul.f32 1.442695, %v290_v13 }
 0x3f7   :  { %v454_v24 = vpop.permute.xlu1 %453 }
 0x3f8   :  { %1822 = vpow2.f32 %v292_v14  ;;  %v459_v38 = vsel %vm183_vm3, %v454_v24, 0 }
 0x3fb   :  { %v289_v15 = vpop.xlane.xlu0 %288 }
 0x3fc   :  { %v291_v16 = vsub.f32 %v282_v7, %v289_v15 }
 0x3fe   :  { %v294_v17 = vmul.f32 1.442695, %v291_v16 }
 0x400   :  { %1824 = vpow2.f32 %v294_v17 }
 0x402   :  { %v1823_v18 = vpop.eup %1822 }
 0x403   :  { %v296_v20 = vsel %vm283_vm5, %v1823_v18, 0.0 }
 0x404   :  { %297 = vadd.xlane.f32.xlu0 %v296_v20 }
 0x40a   :  { %v1825_v21 = vpop.eup %1824 }
 0x40b   :  { %v299_v22 = vsel %vm283_vm5, %v1825_v21, 0.0 }
 0x40c   :  { %300 = vadd.xlane.f32.xlu1 %v299_v22 }
 0x41a   :  { %403 = vrot.lane.b32.xlu0 %v2006_v47, %s1886_s29 }
 0x41d   :  { %401 = vrot.lane.b32.xlu1 %v2006_v47, %s1887_s30 }
 0x421   :  { %451 = vrot.lane.b32.xlu1 %v2010_v52, %s1887_s30 }
 0x491   :  { %v298_v23 = vpop.xlane.xlu0 %297 }
 0x492   :  { %1826 = vrcp.f32 %v298_v23 }
 0x495   :  { %v404_v28 = vpop.permute.xlu0 %403 }
 0x496   :  { %v409_v30 = vsel %vm183_vm3, %v404_v28, 0 }
 0x499   :  { %v301_v25 = vpop.xlane.xlu1 %300 }
 0x49a   :  { %1828 = vrcp.f32 %v301_v25 }
 0x49c   :  { %v1827_v26 = vpop.eup %1826 }
 0x49d   :  { %v304_v27 = vmul.f32 %v1827_v26, %v1823_v18  ;;  %v402_v35 = vpop.permute.xlu1 %401 }
 0x49f   :  { %v306_v29 = vpack.c.bf16 %v304_v27, %v304_v27 }
 0x4a1   :  { %1653 = vmatmul.mubr.msk.bf16.vlgmr.msra.gmra.mrb[0].mxu0 %vm283_vm5, %v306_v29  ;;  %v452_v40 = vpop.permute.xlu1 %451 }
 0x4a2   :  { %1663 = vmatpush3.bf16.xpose.msra.mxu0 %v409_v30  ;;  %1664 = vmatprep.mubr.msk.bf16.mxu0 %vm1884_vm1, %v1883_v34 }
 0x4a3   :  { %1674 = vmatprep.subr.bf16.mxu0 %v1883_v34 }
 0x4a4   :  { %v1829_v31 = vpop.eup %1828 }
 0x4a5   :  { %v305_v32 = vmul.f32 %v1829_v31, %v1825_v21 }
 0x4a7   :  { %v307_v33 = vpack.c.bf16 %v305_v32, %v305_v32 }
 0x4a9   :  { %1659 = vmatmul.mubr.msk.bf16.vlgmr.msra.gmra.mrb[12].mxu1 %vm283_vm5, %v307_v33  ;;  %1665 = vmatmul.mubr.msk.bf16.vlgmr.msra.gmra.mrb[4].mxu0 %vm183_vm3, %v402_v35 }
 0x4aa   :  { %1669 = vmatpush3.bf16.xpose.msra.mxu1 %v459_v38  ;;  %1670 = vmatprep.mubr.msk.bf16.mxu1 %vm1884_vm1, %v1883_v34 }
 0x4ab   :  { %1680 = vmatprep.subr.bf16.mxu1 %v1883_v34  ;;  %1676 = vmatprep.mubr.msk.bf16.mxu0 %vm1884_vm1, %v1883_v34 }
 0x4b1   :  { %1671 = vmatmul.mubr.msk.bf16.vlgmr.msra.gmra.mrb[16].mxu1 %vm183_vm3, %v452_v40 }
 0x4b2   :  { %1682 = vmatprep.mubr.msk.bf16.mxu1 %vm1884_vm1, %v1883_v34 }
 0x574   :  { %v2071_v41 = vpop.f32.mrb[0].mxu0 }
 0x575   :  { %v1654_v42 = vpop.f32.mrb[1].mxu0 }
 0x576   :  { %v352_v43 = vpop.f32.mrb[2].mxu0 }
 0x577   :  { %v1655_v44 = vpop.f32.mrb[3].mxu0 }
 0x57c   :  { %v2073_v45 = vpop.f32.mrb[12].mxu1  ;;  %v445_v46 = vpop.f32.mrb[4].mxu0 }
 0x57d   :  { %v501_v48 = vsel %vm2035_vm4, %v445_v46, -1e+30  ;;  %v1660_v49 = vpop.f32.mrb[13].mxu1  ;;  %v1666_v51 = vpop.f32.mrb[5].mxu0 }
 0x57e   :  { %v398_v53 = vpop.f32.mrb[14].mxu1  ;;  %v448_v54 = vpop.f32.mrb[6].mxu0  ;;  %v503_v55 = vsel %vm283_vm5, %v501_v48, -inf }
 0x57f   :  { %504 = vmax.xlane.f32.xlu0 %v503_v55  ;;  %v1661_v56 = vpop.f32.mrb[15].mxu1  ;;  %v1667_v57 = vpop.f32.mrb[7].mxu0 }
 0x584   :  { %v495_v59 = vpop.f32.mrb[16].mxu1 }
 0x585   :  { %v502_v60 = vsel %vm2035_vm4, %v495_v59, -1e+30  ;;  %v1672_v62 = vpop.f32.mrb[17].mxu1 }
 0x586   :  { %v498_v63 = vpop.f32.mrb[18].mxu1  ;;  %v506_v2 = vsel %vm283_vm5, %v502_v60, -inf }
 0x587   :  { %507 = vmax.xlane.f32.xlu1 %v506_v2  ;;  %v1673_v3 = vpop.f32.mrb[19].mxu1 }
 0x598   :  { %577 = vrot.lane.b32.xlu1 %v2025_v58, %s1887_s30 }
 0x59c   :  { %627 = vrot.lane.b32.xlu1 %v2006_v47, %s1888_s10 }
 0x5a0   :  { %677 = vrot.lane.b32.xlu1 %v2010_v52, %s1888_s10 }
 0x5a4   :  { %675 = vrot.lane.b32.xlu1 %v2010_v52, %s1889_s11 }
 0x60c   :  { %v505_v4 = vpop.xlane.xlu0 %504 }
 0x60d   :  { %v509_v5 = vsub.f32 %v501_v48, %v505_v4 }
 0x60f   :  { %v511_v6 = vmul.f32 1.442695, %v509_v5 }
 0x611   :  { %1830 = vpow2.f32 %v511_v6 }
 0x614   :  { %v508_v7 = vpop.xlane.xlu1 %507 }
 0x615   :  { %v510_v8 = vsub.f32 %v502_v60, %v508_v7 }
 0x617   :  { %v513_v9 = vmul.f32 1.442695, %v510_v8 }
 0x618   :  { %v578_v10 = vpop.permute.xlu1 %577 }
 0x619   :  { %1832 = vpow2.f32 %v513_v9  ;;  %v583_v11 = vsel %vm311_vm2, %v578_v10, 0 }
 0x61a   :  { %1681 = vmatpush3.bf16.msra.mxu1 %v583_v11 }
 0x61b   :  { %v1831_v12 = vpop.eup %1830  ;;  %1692 = vmatprep.subr.bf16.mxu1 %v1883_v34 }
 0x61c   :  { %v515_v13 = vsel %vm283_vm5, %v1831_v12, 0.0  ;;  %v628_v24 = vpop.permute.xlu1 %627 }
 0x61d   :  { %516 = vadd.xlane.f32.xlu0 %v515_v13  ;;  %v633_v28 = vsel %vm183_vm3, %v628_v24, 0 }
 0x620   :  { %v678_v27 = vpop.permute.xlu1 %677 }
 0x621   :  { %v683_v30 = vsel %vm183_vm3, %v678_v27, 0 }
 0x623   :  { %v1833_v14 = vpop.eup %1832 }
 0x624   :  { %v518_v15 = vsel %vm283_vm5, %v1833_v14, 0.0  ;;  %v676_v32 = vpop.permute.xlu1 %675 }
 0x625   :  { %519 = vadd.xlane.f32.xlu0 %v518_v15 }
 0x63b   :  { %528 = vrot.lane.b32.xlu0 %v2008_v50, %s1887_s30 }
 0x63f   :  { %625 = vrot.lane.b32.xlu0 %v2006_v47, %s1889_s11 }
 0x6aa   :  { %v517_v16 = vpop.xlane.xlu0 %516 }
 0x6ab   :  { %1834 = vrcp.f32 %v517_v16 }
 0x6b2   :  { %v520_v17 = vpop.xlane.xlu0 %519 }
 0x6b3   :  { %1836 = vrcp.f32 %v520_v17 }
 0x6b5   :  { %v1835_v18 = vpop.eup %1834 }
 0x6b6   :  { %v523_v20 = vmul.f32 %v1835_v18, %v1831_v12  ;;  %v529_v21 = vpop.permute.xlu0 %528 }
 0x6b7   :  { %v534_v22 = vsel %vm311_vm2, %v529_v21, 0 }
 0x6b8   :  { %1675 = vmatpush3.bf16.msra.mxu0 %v534_v22  ;;  %v525_v23 = vpack.c.bf16 %v523_v20, %v523_v20 }
 0x6b9   :  { %1686 = vmatprep.subr.bf16.mxu0 %v1883_v34 }
 0x6ba   :  { %v626_v31 = vpop.permute.xlu0 %625 }
 0x6bb   :  { %1677 = vmatmul.mubr.msk.bf16.vlgmr.msra.gmra.mrb[8].mxu0 %vm283_vm5, %v525_v23 }
 0x6bc   :  { %1688 = vmatprep.mubr.msk.bf16.mxu0 %vm1884_vm1, %v1883_v34 }
 0x6bd   :  { %v1837_v25 = vpop.eup %1836 }
 0x6be   :  { %v524_v26 = vmul.f32 %v1837_v25, %v1833_v14 }
 0x6c0   :  { %v526_v29 = vpack.c.bf16 %v524_v26, %v524_v26 }
 0x6c1   :  { %1687 = vmatpush3.bf16.xpose.msra.mxu0 %v633_v28 }
 0x6c2   :  { %1683 = vmatmul.mubr.msk.bf16.vlgmr.msra.gmra.mrb[20].mxu1 %vm283_vm5, %v526_v29  ;;  %1698 = vmatprep.subr.bf16.mxu0 %v1883_v34 }
 0x6c3   :  { %1693 = vmatpush3.bf16.xpose.msra.mxu1 %v683_v30  ;;  %1694 = vmatprep.mubr.msk.bf16.mxu1 %vm1884_vm1, %v1883_v34 }
 0x6c4   :  { %1704 = vmatprep.subr.bf16.mxu1 %v1883_v34 }
 0x6c8   :  { %1689 = vmatmul.mubr.msk.bf16.vlgmr.msra.gmra.mrb[12].mxu0 %vm183_vm3, %v626_v31 }
 0x6c9   :  { %1700 = vmatprep.mubr.msk.bf16.mxu0 %vm1884_vm1, %v1883_v34 }
 0x6ca   :  { %1695 = vmatmul.mubr.msk.bf16.vlgmr.msra.gmra.mrb[24].mxu1 %vm183_vm3, %v676_v32 }
 0x6cb   :  { %1706 = vmatprep.mubr.msk.bf16.mxu1 %vm1884_vm1, %v1883_v34 }
 0x78e   :  { %v2115_v33 = vpop.f32.mrb[8].mxu0 }
 0x78f   :  { %v1678_v35 = vpop.f32.mrb[9].mxu0 }
 0x790   :  { %v573_v38 = vpop.f32.mrb[10].mxu0 }
 0x791   :  { %v1679_v40 = vpop.f32.mrb[11].mxu0 }
 0x795   :  { %v2117_v42 = vpop.f32.mrb[20].mxu1 }
 0x796   :  { %v1759_v43 = vpack.i.bf16 %v2117_v42, %v2115_v33  ;;  %v1684_v44 = vpop.f32.mrb[21].mxu1 }
 0x797   :  { %v622_v46 = vpop.f32.mrb[22].mxu1 }
 0x798   :  { %v1685_v48 = vpop.f32.mrb[23].mxu1 }
 0x79b   :  { %v669_v49 = vpop.f32.mrb[12].mxu0 }
 0x79c   :  { %v725_v51 = vsel %vm2035_vm4, %v669_v49, -1e+30  ;;  %v1690_v53 = vpop.f32.mrb[13].mxu0 }
 0x79d   :  { %v672_v54 = vpop.f32.mrb[14].mxu0  ;;  %v719_v55 = vpop.f32.mrb[24].mxu1  ;;  %v727_v56 = vsel %vm283_vm5, %v725_v51, -inf }
 0x79e   :  { %v726_v57 = vsel %vm2035_vm4, %v719_v55, -1e+30  ;;  %728 = vmax.xlane.f32.xlu0 %v727_v56  ;;  %v1691_v59 = vpop.f32.mrb[15].mxu0  ;;  %v1696_v60 = vpop.f32.mrb[25].mxu1 }
 0x79f   :  { %v722_v62 = vpop.f32.mrb[26].mxu1  ;;  %v730_v63 = vsel %vm283_vm5, %v726_v57, -inf }
 0x7a0   :  { %731 = vmax.xlane.f32.xlu1 %v730_v63  ;;  %v1697_v2 = vpop.f32.mrb[27].mxu1 }
 0x7b1   :  { %799 = vrot.lane.b32.xlu1 %v2025_v58, %s1889_s11 }
 0x7b5   :  { %849 = vrot.lane.b32.xlu1 %v2006_v47, %s1890_s12 }
 0x7b9   :  { %899 = vrot.lane.b32.xlu1 %v2010_v52, %s1890_s12 }
 0x7bd   :  { %897 = vrot.lane.b32.xlu1 %v2010_v52, %s1891_s0 }
 0x82b   :  { %v729_v3 = vpop.xlane.xlu0 %728 }
 0x82c   :  { %v733_v4 = vsub.f32 %v725_v51, %v729_v3 }
 0x82d   :  { %v732_v5 = vpop.xlane.xlu1 %731 }
 0x82e   :  { %v735_v6 = vmul.f32 1.442695, %v733_v4  ;;  %v734_v7 = vsub.f32 %v726_v57, %v732_v5 }
 0x830   :  { %1838 = vpow2.f32 %v735_v6  ;;  %v737_v8 = vmul.f32 1.442695, %v734_v7 }
 0x831   :  { %v800_v9 = vpop.permute.xlu1 %799 }
 0x832   :  { %1840 = vpow2.f32 %v737_v8  ;;  %v805_v10 = vsel %vm311_vm2, %v800_v9, 0 }
 0x833   :  { %1705 = vmatpush3.bf16.msra.mxu1 %v805_v10 }
 0x834   :  { %1716 = vmatprep.subr.bf16.mxu1 %v1883_v34 }
 0x835   :  { %v850_v20 = vpop.permute.xlu1 %849 }
 0x839   :  { %v900_v25 = vpop.permute.xlu1 %899 }
 0x83a   :  { %v1839_v11 = vpop.eup %1838  ;;  %v905_v27 = vsel %vm183_vm3, %v900_v25, 0 }
 0x83b   :  { %v739_v12 = vsel %vm283_vm5, %v1839_v11, 0.0 }
 0x83c   :  { %v1841_v13 = vpop.eup %1840  ;;  %740 = vadd.xlane.f32.xlu0 %v739_v12 }
 0x83d   :  { %v742_v52 = vsel %vm283_vm5, %v1841_v13, 0.0  ;;  %v898_v29 = vpop.permute.xlu1 %897 }
 0x840   :  { %743 = vadd.xlane.f32.xlu0 %v742_v52 }
 0x856   :  { %751 = vrot.lane.b32.xlu0 %v2008_v50, %s1889_s11 }
 0x85a   :  { %847 = vrot.lane.b32.xlu0 %v2006_v47, %s1891_s0  ;;  %v855_v47 = vsel %vm183_vm3, %v850_v20, 0  ;;  %v1787_v20 = vld [vmem:[%s2326_s3 + $0x8] sm:$0xff]  }
 0x8c9   :  { %v741_v14 = vpop.xlane.xlu0 %740 }
 0x8ca   :  { %1842 = vrcp.f32 %v741_v14 }
 0x8cd   :  { %v744_v15 = vpop.xlane.xlu0 %743 }
 0x8ce   :  { %1844 = vrcp.f32 %v744_v15 }
 0x8d1   :  { %v752_v16 = vpop.permute.xlu0 %751 }
 0x8d2   :  { %v757_v17 = vsel %vm311_vm2, %v752_v16, 0 }
 0x8d3   :  { %1699 = vmatpush3.bf16.msra.mxu0 %v757_v17 }
 0x8d4   :  { %v1843_v18 = vpop.eup %1842  ;;  %1710 = vmatprep.subr.bf16.mxu0 %v1883_v34 }
 0x8d5   :  { %v747_v21 = vmul.f32 %v1843_v18, %v1839_v11  ;;  %v848_v28 = vpop.permute.xlu0 %847  ;;  %v1786_v18 = vld [vmem:[%s2326_s3] sm:$0xff]  }
 0x8d7   :  { %v749_v22 = vpack.c.bf16 %v747_v21, %v747_v21  ;;  %v1788_v21 = vld [vmem:[%s2326_s3 + $0x10] sm:$0xff]  }
 0x8d8   :  { %v1845_v23 = vpop.eup %1844 }
 0x8d9   :  { %v748_v24 = vmul.f32 %v1845_v23, %v1841_v13  ;;  %1701 = vmatmul.mubr.msk.bf16.vlgmr.msra.gmra.mrb[16].mxu0 %vm283_vm5, %v749_v22 }
 0x8da   :  { %1712 = vmatprep.mubr.msk.bf16.mxu0 %vm1884_vm1, %v1883_v34 }
 0x8db   :  { %v750_v26 = vpack.c.bf16 %v748_v24, %v748_v24 }
 0x8dc   :  { %1711 = vmatpush3.bf16.xpose.msra.mxu0 %v855_v47 }
 0x8dd   :  { %1707 = vmatmul.mubr.msk.bf16.vlgmr.msra.gmra.mrb[28].mxu1 %vm283_vm5, %v750_v26  ;;  %1722 = vmatprep.subr.bf16.mxu0 %v1883_v34 }
 0x8de   :  { %1717 = vmatpush3.bf16.xpose.msra.mxu1 %v905_v27  ;;  %1718 = vmatprep.mubr.msk.bf16.mxu1 %vm1884_vm1, %v1883_v34 }
 0x8df   :  { %1728 = vmatprep.subr.bf16.mxu1 %v1883_v34 }
 0x8e3   :  { %1713 = vmatmul.mubr.msk.bf16.vlgmr.msra.gmra.mrb[20].mxu0 %vm183_vm3, %v848_v28 }
 0x8e4   :  { %1724 = vmatprep.mubr.msk.bf16.mxu0 %vm1884_vm1, %v1883_v34 }
 0x8e5   :  { %1719 = vmatmul.mubr.msk.bf16.vlgmr.msra.gmra.mrb[32].mxu1 %vm183_vm3, %v898_v29 }
 0x8e6   :  { %1730 = vmatprep.mubr.msk.bf16.mxu1 %vm1884_vm1, %v1883_v34 }
 0x9ac   :  { %v793_v30 = vpop.f32.mrb[16].mxu0 }
 0x9ad   :  { %v1702_v31 = vpop.f32.mrb[17].mxu0 }
 0x9ae   :  { %v796_v32 = vpop.f32.mrb[18].mxu0 }
 0x9af   :  { %v1703_v35 = vpop.f32.mrb[19].mxu0 }
 0x9b0   :  { %v841_v38 = vpop.f32.mrb[28].mxu1 }
 0x9b1   :  { %v1764_v40 = vpack.i.bf16 %v841_v38, %v793_v30  ;;  %v1708_v44 = vpop.f32.mrb[29].mxu1 }
 0x9b2   :  { %v844_v46 = vpop.f32.mrb[30].mxu1 }
 0x9b3   :  { %v1709_v48 = vpop.f32.mrb[31].mxu1 }
 0x9b6   :  { %v891_v49 = vpop.f32.mrb[20].mxu0 }
 0x9b7   :  { %v947_v51 = vsel %vm2035_vm4, %v891_v49, -1e+30  ;;  %v1714_v53 = vpop.f32.mrb[21].mxu0 }
 0x9b8   :  { %v894_v54 = vpop.f32.mrb[22].mxu0  ;;  %v941_v55 = vpop.f32.mrb[32].mxu1  ;;  %v949_v56 = vsel %vm283_vm5, %v947_v51, -inf }
 0x9b9   :  { %v948_v57 = vsel %vm2035_vm4, %v941_v55, -1e+30  ;;  %950 = vmax.xlane.f32.xlu0 %v949_v56  ;;  %v1715_v59 = vpop.f32.mrb[23].mxu0  ;;  %v1720_v60 = vpop.f32.mrb[33].mxu1 }
 0x9ba   :  { %v944_v62 = vpop.f32.mrb[34].mxu1  ;;  %v952_v63 = vsel %vm283_vm5, %v948_v57, -inf }
 0x9bb   :  { %953 = vmax.xlane.f32.xlu1 %v952_v63  ;;  %v1721_v2 = vpop.f32.mrb[35].mxu1 }
 0x9cc   :  { %1021 = vrot.lane.b32.xlu1 %v2025_v58, %s1891_s0 }
 0x9d0   :  { %1760 = vrot.lane.b32.xlu1 %v1759_v43, %s1890_s12 }
 0x9d4   :  { %1765 = vrot.lane.b32.xlu1 %v1764_v40, %s1888_s10 }
 0xa46   :  { %v951_v61 = vpop.xlane.xlu0 %950 }
 0xa47   :  { %v955_v3 = vsub.f32 %v947_v51, %v951_v61 }
 0xa48   :  { %v954_v4 = vpop.xlane.xlu1 %953 }
 0xa49   :  { %v957_v5 = vmul.f32 1.442695, %v955_v3  ;;  %v956_v6 = vsub.f32 %v948_v57, %v954_v4  ;;  %v1547_v57 = vld [vmem:[%s2327_s4] ss:$0 sm:$0xff] }
 0xa4b   :  { %1846 = vpow2.f32 %v957_v5  ;;  %v959_v7 = vmul.f32 1.442695, %v956_v6 }
 0xa4c   :  { %v1022_v8 = vpop.permute.xlu1 %1021 }
 0xa4d   :  { %1848 = vpow2.f32 %v959_v7  ;;  %v1027_v9 = vsel %vm311_vm2, %v1022_v8, 0 }
 0xa4e   :  { %1729 = vmatpush3.bf16.msra.mxu1 %v1027_v9 }
 0xa50   :  { %v1761_v30 = vpop.permute.xlu1 %1760 }
 0xa51   :  { %v1763_v32 = vunpack.i.h.bf16 %v1761_v30 }
 0xa53   :  { %v1094_v44 = vsel %vm183_vm3, %v2073_v45, %v1763_v32 }
 0xa54   :  { %v1766_v31 = vpop.permute.xlu1 %1765 }
 0xa55   :  { %v1847_v58 = vpop.eup %1846  ;;  %v1768_v35 = vunpack.i.h.bf16 %v1766_v31  ;;  %v1767_v38 = vunpack.i.l.bf16 %v1766_v31 }
 0xa56   :  { %v961_v10 = vsel %vm283_vm5, %v1847_v58, 0.0 }
 0xa57   :  { %v1849_v11 = vpop.eup %1848  ;;  %962 = vadd.xlane.f32.xlu0 %v961_v10  ;;  %v1097_v53 = vsel %vm1095_vm6, %v1094_v44, %v1768_v35  ;;  %v1814_v44 = vld [vmem:[%s2330_s7 + $0x70] sm:$0xff]  }
 0xa58   :  { %v964_v33 = vsel %vm283_vm5, %v1849_v11, 0.0 }
 0xa5b   :  { %965 = vadd.xlane.f32.xlu0 %v964_v33  ;;  %v1792_v33 = vld [vmem:[%s2328_s5 + $0x4] ss:$8 sps:$4 sm:$0xff]  }
 0xa5c   :  { %1277 = vmatprep.subr.bf16.mxu1 %v1792_v33 }
 0xa71   :  { %973 = vrot.lane.b32.xlu0 %v2008_v50, %s1891_s0 }
 0xae4   :  { %v963_v42 = vpop.xlane.xlu0 %962 }
 0xae5   :  { %1850 = vrcp.f32 %v963_v42  ;;  %v1790_v42 = vld [vmem:[%s2328_s5] ss:$8 sps:$4 sm:$0xff]  }
 0xae8   :  { %v966_v43 = vpop.xlane.xlu0 %965 }
 0xae9   :  { %1852 = vrcp.f32 %v966_v43  ;;  %v1795_v43 = vld [vmem:[%s2328_s5 + $0x14] ss:$8 sps:$4 sm:$0xff]  }
 0xaec   :  { %v974_v12 = vpop.permute.xlu0 %973 }
 0xaed   :  { %v979_v13 = vsel %vm311_vm2, %v974_v12, 0  ;;  %v1793_v12 = vld [vmem:[%s2328_s5 + $0x10] ss:$8 sps:$4 sm:$0xff]  }
 0xaee   :  { %1723 = vmatpush3.bf16.msra.mxu0 %v979_v13  ;;  %v1798_v13 = vld [vmem:[%s2328_s5 + $0x24] ss:$8 sps:$4 sm:$0xff]  }
 0xaef   :  { %v1851_v52 = vpop.eup %1850  ;;  %1734 = vmatprep.subr.bf16.mxu0 %v1883_v34 }
 0xaf0   :  { %v969_v14 = vmul.f32 %v1851_v52, %v1847_v58  ;;  %v1796_v52 = vld [vmem:[%s2328_s5 + $0x20] ss:$8 sps:$4 sm:$0xff]  }
 0xaf2   :  { %v971_v15 = vpack.c.bf16 %v969_v14, %v969_v14  ;;  %v1801_v14 = vld [vmem:[%s2328_s5 + $0x34] ss:$8 sps:$4 sm:$0xff]  }
 0xaf3   :  { %v1853_v16 = vpop.eup %1852 }
 0xaf4   :  { %v970_v17 = vmul.f32 %v1853_v16, %v1849_v11  ;;  %1725 = vmatmul.mubr.msk.bf16.vlgmr.msra.gmra.mrb[24].mxu0 %vm283_vm5, %v971_v15  ;;  %v1799_v15 = vld [vmem:[%s2328_s5 + $0x30] ss:$8 sps:$4 sm:$0xff]   ;;  %v1802_v16 = vld [vmem:[%s2330_s7 + $0x40] sm:$0xff]   ;;  %s1511_s5 = sshll.u32 %s1892_s20, 4  ;;  %s1512_s5 = int_to_ptr.vmem [resolvable:$true] %s1511_s5 }
 0xaf5   :  { %1742 = vmatprep.mubr.msk.bf16.mxu0 %vm1884_vm1, %v1883_v34  ;;  %1735 = vmatpush3.bf16.msra.mxu0 %v1786_v18  ;;  %v1805_v18 = vld [vmem:[%s2330_s7 + $0x8] sm:$0xff]   ;;  %p1863_p1 = scmp.lt.s32.totalorder %s1512_s5, %s1512_s5 }
 0xaf6   :  { %v972_v50 = vpack.c.bf16 %v970_v17, %v970_v17  ;;  %1736 = vmatprep.subr.bf16.mxu0 %v1883_v34  ;;  %v1803_v17 = vld [vmem:[%s2330_s7] sm:$0xff]  }
 0xaf8   :  { %1731 = vmatmul.mubr.msk.bf16.vlgmr.msra.gmra.mrb[36].mxu1 %vm283_vm5, %v972_v50  ;;  %v1804_v50 = vld [vmem:[%s2330_s7 + $0x48] sm:$0xff]  }
 0xaf9   :  { %1309 = vmatprep.mubr.bf16.mxu1 %v1882_v19  ;;  %1737 = vmatpush3.bf16.msra.mxu0 %v1787_v20  ;;  %v1789_v19 = vld [vmem:[%s2326_s3 + $0x18] sm:$0xff]   ;;  %v1806_v20 = vld [vmem:[%s2330_s7 + $0x50] sm:$0xff]   ;;  %s1858_s3 = scalar_lea.vmem %s1512_s5, 256 }
 0xafa   :  { %1738 = vmatprep.subr.bf16.mxu0 %v1883_v34  ;;  %1278 = vmatpush1.bf16.msra.mxu1 %v1790_v42  ;;  %p1859_p0 = scmp.ne.s32.totalorder %s1512_s5, %s1858_s3  ;;  %p1864_p2 = scmp.lt.s32.totalorder %s1858_s3, %s1858_s3 }
 0xafb   :  { %1279 = vmatprep.subr.bf16.mxu1 %v1795_v43 }
 0xafc   :  { %p1865_p3 = por %p1864_p2, %p1863_p1 }
 0xafd   :  { %1739 = vmatpush3.bf16.msra.mxu0 %v1788_v21  ;;  %v1807_v21 = vld [vmem:[%s2330_s7 + $0x10] sm:$0xff]  }
 0xafe   :  { %1740 = vmatprep.subr.bf16.mxu0 %v1883_v34  ;;  %v1762_v34 = vunpack.i.l.bf16 %v1761_v30  ;;  %1280 = vmatpush1.bf16.msra.mxu1 %v1793_v12  ;;  %p1866_p4 = pnand %p1865_p3, %p1859_p0 }
 0xaff   :  { %1281 = vmatprep.subr.bf16.mxu1 %v1798_v13 }
 0xb00   :  { %v1093_v46 = vsel %vm183_vm3, %v2071_v41, %v1762_v34 }
 0xb01   :  { %1741 = vmatpush3.bf16.msra.mxu0 %v1789_v19  ;;  %v1096_v51 = vsel %vm1095_vm6, %v1093_v46, %v1767_v38  ;;  %v1808_v19 = vld [vmem:[%s2330_s7 + $0x58] sm:$0xff]   ;;  %v1815_v46 = vld [vmem:[%s2330_s7 + $0x30] sm:$0xff]  }
 0xb02   :  { %1282 = vmatpush1.bf16.msra.mxu1 %v1796_v52  ;;  %1616 = vmatprep.subr.bf16.mxu0 %v1802_v16 }
 0xb03   :  { %1283 = vmatprep.subr.bf16.mxu1 %v1801_v14 }
 0xb06   :  { %1284 = vmatpush1.bf16.msra.mxu1 %v1799_v15 }
 0xbc7   :  { %v1015_v22 = vpop.f32.mrb[24].mxu0 }
 0xbc8   :  { %v1726_v23 = vpop.f32.mrb[25].mxu0 }
 0xbc9   :  { %v1018_v24 = vpop.f32.mrb[26].mxu0  ;;  %v1810_v23 = vld [vmem:[%s2330_s7 + $0x60] sm:$0xff]  }
 0xbca   :  { %v1727_v25 = vpop.f32.mrb[27].mxu0  ;;  %v1811_v24 = vld [vmem:[%s2330_s7 + $0x20] sm:$0xff]  }
 0xbcb   :  { %v1063_v47 = vpop.f32.mrb[36].mxu1  ;;  %v1812_v25 = vld [vmem:[%s2330_s7 + $0x68] sm:$0xff]  }
 0xbcc   :  { %v1769_v26 = vpack.i.bf16 %v1063_v47, %v1015_v22  ;;  %v1732_v27 = vpop.f32.mrb[37].mxu1  ;;  %v1809_v22 = vld [vmem:[%s2330_s7 + $0x18] sm:$0xff]  }
 0xbcd   :  { %v1066_v28 = vpop.f32.mrb[38].mxu1 }
 0xbce   :  { %1770 = vrot.lane.b32.xlu0 %v1769_v26, %s1886_s29  ;;  %v1733_v29 = vpop.f32.mrb[39].mxu1 }
 0xc40   :  { %v1771_v40 = vpop.permute.xlu0 %1770 }
 0xc41   :  { %v1773_v48 = vunpack.i.h.bf16 %v1771_v40  ;;  %v1772_v49 = vunpack.i.l.bf16 %v1771_v40  ;;  %v1813_v40 = vld [vmem:[%s2330_s7 + $0x28] sm:$0xff]  }
 0xc43   :  { %v1100_v54 = vsel %vm1098_vm7, %v1097_v53, %v1773_v48  ;;  %v1099_v55 = vsel %vm1098_vm7, %v1096_v51, %v1772_v49  ;;  %v1816_v48 = vld [vmem:[%s2330_s7 + $0x78] sm:$0xff]   ;;  %v1222_v51 = vld [vmem:[%s2329_s6] sm:$0x3] }
 0xc44   :  { %v1101_v56 = vpack.c.bf16 %v1100_v54, %v1099_v55  ;;  %v1817_v49 = vld [vmem:[%s2330_s7 + $0x38] sm:$0xff]   ;;  %v1227_v53 = vrot.slane %v1222_v51, %v77_v37  ;;  %v1231_v54 = vrot.slane %v1222_v51, %v81_v39 }
 0xc46   :  { %1743 = vmatmul.mubr.msk.bf16.vlgmr.msra.gmra.mrb[28].mxu0 %vm36_vm0, %v1101_v56 }
 0xc47   :  { %1617 = vmatpush3.bf16.msra.mxu0 %v1803_v17 }
 0xc48   :  { %1618 = vmatprep.subr.bf16.mxu0 %v1804_v50 }
 0xc4b   :  { %1619 = vmatpush3.bf16.msra.mxu0 %v1805_v18 }
 0xc4c   :  { %1620 = vmatprep.subr.bf16.mxu0 %v1806_v20 }
 0xc4f   :  { %1621 = vmatpush3.bf16.msra.mxu0 %v1807_v21 }
 0xc50   :  { %1622 = vmatprep.subr.bf16.mxu0 %v1808_v19 }
 0xc53   :  { %1623 = vmatpush3.bf16.msra.mxu0 %v1809_v22 }
 0xc54   :  { %1624 = vmatprep.subr.bf16.mxu0 %v1810_v23 }
 0xc57   :  { %1625 = vmatpush3.bf16.msra.mxu0 %v1811_v24 }
 0xc58   :  { %1626 = vmatprep.subr.bf16.mxu0 %v1812_v25 }
 0xc5b   :  { %1627 = vmatpush3.bf16.msra.mxu0 %v1813_v40 }
 0xc5c   :  { %1628 = vmatprep.subr.bf16.mxu0 %v1814_v44 }
 0xc5f   :  { %1629 = vmatpush3.bf16.msra.mxu0 %v1815_v46 }
 0xc60   :  { %1630 = vmatprep.subr.bf16.mxu0 %v1816_v48 }
 0xc63   :  { %1631 = vmatpush3.bf16.msra.mxu0 %v1817_v49 }
 0xd19   :  { %v1178_v59 = vpop.f32.mrb[28].mxu0 }
 0xd1a   :  { %v1179_v60 = vadd.f32 %v1547_v57, %v1178_v59  ;;  %v1744_v62 = vpop.f32.mrb[29].mxu0 }
 0xd1b   :  { %v1181_v45 = vpop.f32.mrb[30].mxu0 }
 0xd1c   :  { %v2211_v63 = vadd.f32 %v1179_v60, %v1948_v0  ;;  %v1182_v41 = vadd.f32 %v1547_v57, %v1181_v45  ;;  %v1745_v2 = vpop.f32.mrb[31].mxu0 }
 0xd1e   :  { %v2214_v61 = vadd.f32 %v1182_v41, %v1953_v1  ;;  %v1187_v3 = vsel %vm36_vm0, %v2211_v63, 0.0 }
 0xd1f   :  { %1188 = vadd.xlane.f32.xlu1 %v1187_v3 }
 0xd20   :  { %v1190_v4 = vsel %vm36_vm0, %v2214_v61, 0.0 }
 0xd21   :  { %1191 = vadd.xlane.f32.xlu0 %v1190_v4 }
 0xdac   :  { %v1189_v5 = vpop.xlane.xlu1 %1188 }
 0xdad   :  { %v1193_v6 = vmul.f32 0.015625, %v1189_v5 }
 0xdae   :  { %v1192_v7 = vpop.xlane.xlu0 %1191 }
 0xdaf   :  { %v1195_v8 = vsub.f32 %v2211_v63, %v1193_v6  ;;  %v1194_v0 = vmul.f32 0.015625, %v1192_v7 }
 0xdb1   :  { %v1196_v9 = vsub.f32 %v2214_v61, %v1194_v0  ;;  %v1197_v58 = vmul.f32 %v1195_v8, %v1195_v8 }
 0xdb3   :  { %v1199_v1 = vsel %vm36_vm0, %v1197_v58, 0.0  ;;  %v1198_v10 = vmul.f32 %v1196_v9, %v1196_v9 }
 0xdb4   :  { %1200 = vadd.xlane.f32.xlu0 %v1199_v1 }
 0xdb5   :  { %v1202_v11 = vsel %vm36_vm0, %v1198_v10, 0.0 }
 0xdb8   :  { %1203 = vadd.xlane.f32.xlu0 %v1202_v11 }
 0xe41   :  { %v1201_v47 = vpop.xlane.xlu0 %1200 }
 0xe42   :  { %v1205_v26 = vmul.f32 0.015625, %v1201_v47 }
 0xe44   :  { %v1207_v27 = vadd.f32 1e-05, %v1205_v26 }
 0xe45   :  { %v1204_v28 = vpop.xlane.xlu0 %1203 }
 0xe46   :  { %v1206_v29 = vmul.f32 0.015625, %v1204_v28  ;;  %1854 = vrsqrt.f32 %v1207_v27 }
 0xe48   :  { %v1208_v30 = vadd.f32 1e-05, %v1206_v29 }
 0xe4a   :  { %1856 = vrsqrt.f32 %v1208_v30 }
 0xe50   :  { %v1855_v31 = vpop.eup %1854 }
 0xe51   :  { %v1211_v34 = vmul.f32 %v1855_v31, %v1195_v8 }
 0xe54   :  { %v1857_v32 = vpop.eup %1856 }
 0xe55   :  { %v1212_v35 = vmul.f32 %v1857_v32, %v1196_v9 }
 0xe57   :  { %v1213_v38 = vpack.c.bf16 %v1212_v35, %v1211_v34 }
 0xe59   :  { %1561 = vmatmul.mubr.msk.bf16.vlgmr.msra.gmra.mrb[40].mxu1 %vm36_vm0, %v1213_v38 }
 0xf2c   :  { %v1311_v55 = vpop.f32.mrb[40].mxu1 }
 0xf2d   :  { %v1312_v56 = vadd.f32 %v1311_v55, %v1227_v53  ;;  %v1313_v57 = vpop.f32.mrb[41].mxu1 }
 0xf2e   :  { %v1314_v59 = vadd.f32 %v1313_v57, %v1231_v54  ;;  %v1315_v60 = vpop.f32.mrb[42].mxu1 }
 0xf2f   :  { %v1316_v62 = vadd.f32 %v1315_v60, %v1227_v53  ;;  %v1317_v45 = vpop.f32.mrb[43].mxu1  ;;  %v1320_v2 = vmax.f32 %v1312_v56, 0.0 }
 0xf30   :  { %v1318_v41 = vadd.f32 %v1317_v45, %v1231_v54  ;;  %v1321_v4 = vmax.f32 %v1314_v59, 0.0 }
 0xf31   :  { %v1322_v3 = vmax.f32 %v1316_v62, 0.0 }
 0xf32   :  { %v1323_v5 = vmax.f32 %v1318_v41, 0.0 }
 0xf33   :  { %v1324_v6 = vpack.c.bf16 %v1322_v3, %v1320_v2 }
 0xf34   :  { %v1325_v7 = vpack.c.bf16 %v1323_v5, %v1321_v4 }
 0xf36   :  { %1493 = vmatprep.mubr.bf16.mxu0 %v1325_v7 }
 0xf37   :  { %1494 = vmatmul.mubr.bf16.vlgmr.msra.gmra.mrb[32].mxu0 %v1324_v6 }
0x100a   :  { %v1632_v37 = vpop.f32.mrb[32].mxu0 }
0x100b   :  { %v1633_v39 = vpop.f32.mrb[33].mxu0 }
0x100c   :  { %v1634_v8 = vadd.f32 %v1633_v39, %v1632_v37  ;;  %v1635_v0 = vpop.f32.mrb[34].mxu0 }
0x100d   :  { %v1636_v9 = vpop.f32.mrb[35].mxu0 }
0x100e   :  { %v1496_v58 = vadd.f32 %v1634_v8, %v1562_v36  ;;  %v1637_v1 = vadd.f32 %v1636_v9, %v1635_v0 }
0x1010   :  { %v1502_v10 = vadd.f32 %v1496_v58, %v2211_v63  ;;  %v1499_v11 = vadd.f32 %v1637_v1, %v1562_v36 }
0x1012   :  { %1504 = vst.msk [vmem:[#allocation2] sm:$0xff] %vm36_vm0, %v1502_v10  ;;  %v1503_v33 = vadd.f32 %v1499_v11, %v2214_v61 }
0x1014   :  { %1505 = vst.msk [vmem:[#allocation2 + $0x8] sm:$0xff] %vm36_vm0, %v1503_v33 }
0x1015   :  { %1869 = shalt.err (!%p1866_p4)
}
0x1016   :  { %s1870_s4 = scalar_lea.hbm %s2332_s9, 256 }
0x1017   :  { %p1871_p5 = scmp.ne.s32.totalorder %s2332_s9, %s1870_s4  ;;  %p1874_p6 = scmp.lt.u32.totalorder %s1870_s4, %s2332_s9 }
0x1019   :  { %p1876_p7 = pnand %p1874_p6, %p1871_p5 }
0x101b   :  { %1879 = shalt.err (!%p1876_p7)
}
0x101c   :  { %s1893_s26 = smov 128   ;;  %s1894_s27 = smov 8  }
0x101d   :  { %1517 = dma.vmem_to_hbm [thread:$0]  %s1512_s5, 256, %s2332_s9, [#allocation3], %s1893_s26, %s1893_s26, %s1894_s27  }
0x101e   :  { %1880 = dma.done.wait [#allocation3], 256  }
0x101f   :  { %1881 = vsyncadd [#allocation3], 4294967040 }
0x1020   :  { %1521 = vsyncpa [#allocation3], 1 }

</bundles_post_ra>
